<compile_context>
chip_gen: v6e
topology: v6e:2x2x1
jax: 0.10.0
libtpu: 0.0.40
codegen_flags: <defaults>
</compile_context>

<pallas_src>
import functools

import jax
import jax.numpy as jnp
from jax.experimental import pallas as pl
from jax.experimental.pallas import tpu as pltpu

IMG_DIM = 1000    # resnet152 output (ImageNet logits)
TXT_DIM = 768     # all-mpnet-base-v2 embedding size
HIDDEN = 32
DROP_PROB = 0.1   # dropout is identity at inference (eval mode)
TILE_N = 2048     # batch rows per grid step; must be a multiple of 128 when
                  # the batch spans multiple grid steps
VMEM_LIMIT_BYTES = 48 << 20   # > ~28 MiB of double-buffered f32 feature blocks


def head_kernel(img_ref, txt_ref, w1i_ref, w1t_ref, b1_ref, w2_ref, b2_ref,
                out_ref):
    # ReLU in f32 on the VPU (native on v5e too), cast to bf16 only as the MXU
    # operands (halves MXU input width; accumulation stays f32).
    img = jnp.maximum(img_ref[...], 0.0).astype(jnp.bfloat16)   # (TN, 1000)
    txt = jnp.maximum(txt_ref[...], 0.0).astype(jnp.bfloat16)   # (TN, 768)

    # fc1 over the concatenation as a split matmul on the MXU, f32 accumulate:
    #   concat([img, txt], 1) @ W1 == img @ W1[:1000] + txt @ W1[1000:]
    h = (jnp.dot(img, w1i_ref[...], preferred_element_type=jnp.float32)
         + jnp.dot(txt, w1t_ref[...], preferred_element_type=jnp.float32)
         + b1_ref[...])                                          # (TN, H) f32
    h = jnp.maximum(h, 0.0)

    # Dropout: eval-mode identity.
    # TODO(synk): training-mode dropout would use pltpu.prng_seed + stateful_bernoulli.

    # fc2 (H -> 1) on the VPU/XLU: elementwise mul + lane reduce, then the
    # (TN,) result is stored as a lane-dense (1, 1, TN) row (XLU relayout is
    # otherwise-idle work) so the writeback is an unmasked full-lane store.
    col = jnp.sum(h * w2_ref[...], axis=-1) + b2_ref[0]          # (TN,)
    out_ref[...] = col.reshape(out_ref.shape)


def prepare_head_params(w1, b1, w2, b2):
    """One-time weight formatting, hoisted out of the per-call jitted path."""
    H = w1.shape[1]
    w1_img = w1[:IMG_DIM, :].astype(jnp.bfloat16)                # (1000, H)
    w1_txt = w1[IMG_DIM:, :].astype(jnp.bfloat16)                # (768, H)
    b1_row = b1.reshape(1, H).astype(jnp.float32)                # (1, H)
    w2_row = w2.reshape(1, H).astype(jnp.float32)                # (1, H)
    b2_vec = b2.reshape(1).astype(jnp.float32)                   # (1,) -> SMEM
    return (w1_img, w1_txt, b1_row, w2_row, b2_vec)


@functools.partial(jax.jit, static_argnames=("tile_n",))
def baseline_head(img_feat, txt_feat, params, *, tile_n=TILE_N):
    """img_feat: (N, 1000) f32, txt_feat: (N, 768) f32, params from
    prepare_head_params().  Returns (N, 1) float32 logits."""
    w1_img, w1_txt, b1_row, w2_row, b2_vec = params
    N = img_feat.shape[0]
    H = w1_img.shape[1]
    tn = N if N <= tile_n else tile_n
    num_tiles = pl.cdiv(N, tn)

    row_spec = lambda d: pl.BlockSpec((tn, d), lambda i: (i, 0))
    const_spec = lambda s: pl.BlockSpec(s, lambda i: (0,) * len(s))

    out = pl.pallas_call(
        head_kernel,
        out_shape=jax.ShapeDtypeStruct((num_tiles, 1, tn), jnp.float32),
        grid=(num_tiles,),
        in_specs=[
            row_spec(IMG_DIM),                 # img features, streamed f32
            row_spec(TXT_DIM),                 # txt features, streamed f32
            const_spec((IMG_DIM, H)),          # W1 (img rows), VMEM-resident
            const_spec((TXT_DIM, H)),          # W1 (txt rows), VMEM-resident
            const_spec((1, H)),                # b1
            const_spec((1, H)),                # w2 row (for VPU fc2)
            pl.BlockSpec((1,), lambda i: (0,),
                         memory_space=pltpu.MemorySpace.SMEM),   # b2 scalar
        ],
        out_specs=pl.BlockSpec((1, 1, tn), lambda i: (i, 0, 0)),
        compiler_params=pltpu.CompilerParams(
            dimension_semantics=("parallel",),
            vmem_limit_bytes=VMEM_LIMIT_BYTES),
    )(img_feat, txt_feat, w1_img, w1_txt, b1_row, w2_row, b2_vec)

    # Drop the ragged-tail rows (>= N) of the lane-dense output, restore (N, 1).
    return out.reshape(num_tiles * tn)[:N].reshape(N, 1)


def reference_head(img_feat, txt_feat, w1, b1, w2, b2):
    # Same math as the PyTorch head, with the same bf16 rounding applied to the
    # (post-relu) feature streams / fc1 weights as the kernel (f32 accumulation).
    cast = lambda x: x.astype(jnp.bfloat16).astype(jnp.float32)
    img = cast(jnp.maximum(img_feat, 0.0))
    txt = cast(jnp.maximum(txt_feat, 0.0))
    combined = jnp.concatenate([img, txt], axis=1)
    h = jnp.maximum(
        jnp.dot(combined, cast(w1), precision=jax.lax.Precision.HIGHEST) + b1,
        0.0)
    return jnp.dot(h, w2, precision=jax.lax.Precision.HIGHEST) + b2


def _run_case(n, keys, tile_n=TILE_N):
    k_img, k_txt, k_w1, k_b1, k_w2, k_b2 = keys
    img_feat = jax.random.normal(k_img, (n, IMG_DIM), dtype=jnp.float32)
    txt_feat = jax.random.normal(k_txt, (n, TXT_DIM), dtype=jnp.float32)
    w1 = jax.random.normal(k_w1, (IMG_DIM + TXT_DIM, HIDDEN),
                           dtype=jnp.float32) * 0.02
    b1 = jax.random.normal(k_b1, (HIDDEN,), dtype=jnp.float32) * 0.02
    w2 = jax.random.normal(k_w2, (HIDDEN, 1), dtype=jnp.float32) * 0.02
    b2 = jax.random.normal(k_b2, (1,), dtype=jnp.float32) * 0.02

    params = prepare_head_params(w1, b1, w2, b2)
    out = jax.block_until_ready(
        baseline_head(img_feat, txt_feat, params, tile_n=tile_n))
    ref = reference_head(img_feat, txt_feat, w1, b1, w2, b2)
    assert out.shape == (n, 1)
    assert jnp.allclose(out, ref, atol=2e-3, rtol=2e-3), \
        f"mismatch vs reference (N={n}, tile_n={tile_n})"


if __name__ == "__main__":
    key = jax.random.PRNGKey(0)
    keys = jax.random.split(key, 6)

    # Small primary case (single block, full-array block shapes).
    _run_case(2, keys)
    # Case exercising the pipelined grid with a ragged tail (3 steps at tn=256).
    _run_case(600, keys, tile_n=256)

    print("KERNEL_OK")
</pallas_src>

<mosaic_0001>
module attributes {stable_mosaic.version = 11 : i64} {
  func.func @head_kernel(%arg0: i32, %arg1: memref<2x1000xf32, #tpu.memory_space<vmem>>, %arg2: memref<2x768xf32, #tpu.memory_space<vmem>>, %arg3: memref<1000x32xbf16, #tpu.memory_space<vmem>>, %arg4: memref<768x32xbf16, #tpu.memory_space<vmem>>, %arg5: memref<1x32xf32, #tpu.memory_space<vmem>>, %arg6: memref<1x32xf32, #tpu.memory_space<vmem>>, %arg7: memref<1xf32, #tpu.memory_space<smem>>, %arg8: memref<1x1x2xf32, #tpu.memory_space<vmem>>) attributes {dimension_semantics = [#tpu.dimension_semantics<parallel>], iteration_bounds = array<i64: 1>, scalar_prefetch = 0 : i64, scratch_operands = 0 : i64, tpu.core_type = #tpu.core_type<tc>, window_params = [{transform_indices = @transform_0, window_bounds = array<i64: 2, 1000>}, {transform_indices = @transform_1, window_bounds = array<i64: 2, 768>}, {pipeline_mode = #tpu.pipeline_mode<synchronous>, transform_indices = @transform_2, window_bounds = array<i64: 1000, 32>}, {pipeline_mode = #tpu.pipeline_mode<synchronous>, transform_indices = @transform_3, window_bounds = array<i64: 768, 32>}, {pipeline_mode = #tpu.pipeline_mode<synchronous>, transform_indices = @transform_4, window_bounds = array<i64: 1, 32>}, {pipeline_mode = #tpu.pipeline_mode<synchronous>, transform_indices = @transform_5, window_bounds = array<i64: 1, 32>}, {transform_indices = @transform_6, window_bounds = array<i64: 1>}, {transform_indices = @transform_7, window_bounds = array<i64: 1, 1, 2>}]} {
    %c0 = arith.constant 0 : index
    %c0_0 = arith.constant 0 : index
    %0 = vector.load %arg1[%c0, %c0_0] : memref<2x1000xf32, #tpu.memory_space<vmem>>, vector<2x1000xf32>
    %cst = arith.constant 0.000000e+00 : f32
    %1 = vector.broadcast %cst : f32 to vector<2x1000xf32>
    %2 = arith.maximumf %0, %1 : vector<2x1000xf32>
    %3 = arith.truncf %2 : vector<2x1000xf32> to vector<2x1000xbf16>
    %c0_1 = arith.constant 0 : index
    %c0_2 = arith.constant 0 : index
    %4 = vector.load %arg2[%c0_1, %c0_2] : memref<2x768xf32, #tpu.memory_space<vmem>>, vector<2x768xf32>
    %cst_3 = arith.constant 0.000000e+00 : f32
    %5 = vector.broadcast %cst_3 : f32 to vector<2x768xf32>
    %6 = arith.maximumf %4, %5 : vector<2x768xf32>
    %7 = arith.truncf %6 : vector<2x768xf32> to vector<2x768xbf16>
    %c0_4 = arith.constant 0 : index
    %c0_5 = arith.constant 0 : index
    %8 = vector.load %arg3[%c0_4, %c0_5] : memref<1000x32xbf16, #tpu.memory_space<vmem>>, vector<1000x32xbf16>
    %cst_6 = arith.constant dense<0.000000e+00> : vector<2x32xf32>
    %9 = tpu.matmul %3, %8, %cst_6 {dimension_numbers = #tpu.dot_dimension_numbers<[1], [0], [0], [1], [0, 0, 1, 1], [], []>} : vector<2x1000xbf16>, vector<1000x32xbf16>, vector<2x32xf32> -> vector<2x32xf32>
    %c0_7 = arith.constant 0 : index
    %c0_8 = arith.constant 0 : index
    %10 = vector.load %arg4[%c0_7, %c0_8] : memref<768x32xbf16, #tpu.memory_space<vmem>>, vector<768x32xbf16>
    %cst_9 = arith.constant dense<0.000000e+00> : vector<2x32xf32>
    %11 = tpu.matmul %7, %10, %cst_9 {dimension_numbers = #tpu.dot_dimension_numbers<[1], [0], [0], [1], [0, 0, 1, 1], [], []>} : vector<2x768xbf16>, vector<768x32xbf16>, vector<2x32xf32> -> vector<2x32xf32>
    %12 = arith.addf %9, %11 : vector<2x32xf32>
    %c0_10 = arith.constant 0 : index
    %c0_11 = arith.constant 0 : index
    %13 = vector.load %arg5[%c0_10, %c0_11] : memref<1x32xf32, #tpu.memory_space<vmem>>, vector<1x32xf32>
    %14 = vector.broadcast %13 : vector<1x32xf32> to vector<2x32xf32>
    %15 = arith.addf %12, %14 : vector<2x32xf32>
    %cst_12 = arith.constant 0.000000e+00 : f32
    %16 = vector.broadcast %cst_12 : f32 to vector<2x32xf32>
    %17 = arith.maximumf %15, %16 : vector<2x32xf32>
    %c0_13 = arith.constant 0 : index
    %c0_14 = arith.constant 0 : index
    %18 = vector.load %arg6[%c0_13, %c0_14] : memref<1x32xf32, #tpu.memory_space<vmem>>, vector<1x32xf32>
    %19 = vector.broadcast %18 : vector<1x32xf32> to vector<2x32xf32>
    %20 = arith.mulf %17, %19 : vector<2x32xf32>
    %cst_15 = arith.constant dense<0.000000e+00> : vector<2xf32>
    %21 = vector.multi_reduction <add>, %20, %cst_15 [1] : vector<2x32xf32> to vector<2xf32>
    %c0_16 = arith.constant 0 : index
    %22 = memref.load %arg7[%c0_16] : memref<1xf32, #tpu.memory_space<smem>>
    %23 = vector.broadcast %22 : f32 to vector<2xf32>
    %24 = arith.addf %21, %23 : vector<2xf32>
    %25 = vector.shape_cast %24 : vector<2xf32> to vector<1x1x2xf32>
    %c0_17 = arith.constant 0 : index
    %c0_18 = arith.constant 0 : index
    %c0_19 = arith.constant 0 : index
    %26 = vector.load %arg8[%c0_17, %c0_18, %c0_19] : memref<1x1x2xf32, #tpu.memory_space<vmem>>, vector<1x1x2xf32>
    tpu.vector_store %arg8[%c0_17, %c0_18, %c0_19], %25 {strides = array<i32>} : memref<1x1x2xf32, #tpu.memory_space<vmem>>, vector<1x1x2xf32>,
    return
  }
  func.func @transform_0(%arg0: i32) -> (i32, i32) {
    %c0_i32 = arith.constant 0 : i32
    %c0_i32_0 = arith.constant 0 : i32
    return %arg0, %c0_i32 : i32, i32
  }
  func.func @transform_1(%arg0: i32) -> (i32, i32) {
    %c0_i32 = arith.constant 0 : i32
    %c0_i32_0 = arith.constant 0 : i32
    return %arg0, %c0_i32 : i32, i32
  }
  func.func @transform_2(%arg0: i32) -> (i32, i32) {
    %c0_i32 = arith.constant 0 : i32
    %c0_i32_0 = arith.constant 0 : i32
    %c0_i32_1 = arith.constant 0 : i32
    return %c0_i32, %c0_i32_0 : i32, i32
  }
  func.func @transform_3(%arg0: i32) -> (i32, i32) {
    %c0_i32 = arith.constant 0 : i32
    %c0_i32_0 = arith.constant 0 : i32
    %c0_i32_1 = arith.constant 0 : i32
    return %c0_i32, %c0_i32_0 : i32, i32
  }
  func.func @transform_4(%arg0: i32) -> (i32, i32) {
    %c0_i32 = arith.constant 0 : i32
    %c0_i32_0 = arith.constant 0 : i32
    %c0_i32_1 = arith.constant 0 : i32
    return %c0_i32, %c0_i32_0 : i32, i32
  }
  func.func @transform_5(%arg0: i32) -> (i32, i32) {
    %c0_i32 = arith.constant 0 : i32
    %c0_i32_0 = arith.constant 0 : i32
    %c0_i32_1 = arith.constant 0 : i32
    return %c0_i32, %c0_i32_0 : i32, i32
  }
  func.func @transform_6(%arg0: i32) -> i32 {
    %c0_i32 = arith.constant 0 : i32
    %c0_i32_0 = arith.constant 0 : i32
    return %c0_i32 : i32
  }
  func.func @transform_7(%arg0: i32) -> (i32, i32, i32) {
    %c0_i32 = arith.constant 0 : i32
    %c0_i32_0 = arith.constant 0 : i32
    %c0_i32_1 = arith.constant 0 : i32
    return %arg0, %c0_i32, %c0_i32_0 : i32, i32, i32
  }
}

</mosaic_0001>

<bundles_post_ra>
// kernel: baseline_head.1
= control target key start
LH: loop header
LB: loop body
LE: loop exit
PB: predicated region body
PF: predicated region fallthrough
CT: control target
= control target key end

     0   :  { %v39_v26 = vlaneseq  ;;  %v1730_v34 = vmov 1983009808   ;;  %vm1136_vm0 = vcmask 1043456   ;;  %s2172_s0 = inlined_call_operand.vmem [shape: f32[2,1000], index: 0, kind: input, shape index: {}]   ;;  %s2173_s1 = inlined_call_operand.vmem [shape: f32[2,768], index: 1, kind: input, shape index: {}]   ;;  %s2174_s2 = inlined_call_operand.vmem [shape: bf16[1000,32], index: 2, kind: input, shape index: {}]   ;;  %s2175_s3 = inlined_call_operand.vmem [shape: bf16[768,32], index: 3, kind: input, shape index: {}]   ;;  %s2176_s4 = inlined_call_operand.vmem [shape: f32[1,32], index: 4, kind: input, shape index: {}]   ;;  %s2177_s5 = inlined_call_operand.vmem [shape: f32[1,32], index: 5, kind: input, shape index: {}]   ;;  %s2178_s6 = inlined_call_operand.<no memory space> [shape: f32[1], index: 6, kind: input, shape index: {}]   ;;  %s2179_s7 = inlined_call_operand.hbm [shape: f32[1,1,2], index: 7, kind: output, shape index: {}]  }
   0x1   :  { %v1597_v0 = vld [vmem:[%s2175_s3 + $0x78] sm:$0xff]   ;;  %v1599_v2 = vld [vmem:[%s2175_s3 + $0x70] sm:$0xff]   ;;  %v1603_v6 = vld [vmem:[%s2175_s3 + $0x68] sm:$0xff]   ;;  %v37_v35 = vunpack.c.l.s4 %v1730_v34 }
   0x2   :  { %v1598_v1 = vld [vmem:[%s2175_s3 + $0x38] sm:$0xff]   ;;  %1462 = vmatprep.subr.bf16.mxu1 %v1597_v0  ;;  %v1601_v4 = vld [vmem:[%s2175_s3 + $0x30] sm:$0xff]   ;;  %v1605_v8 = vld [vmem:[%s2175_s3 + $0x28] sm:$0xff]   ;;  %v1864_v31 = vshrl.u32 %v39_v26, 7 }
   0x3   :  { %1463 = vmatpush3.bf16.msra.mxu1 %v1598_v1  ;;  %v1600_v3 = vld [vmem:[%s2175_s3 + $0x178] sm:$0xff]   ;;  %v1604_v7 = vld [vmem:[%s2175_s3 + $0x170] sm:$0xff]   ;;  %v1607_v10 = vld [vmem:[%s2175_s3 + $0x60] sm:$0xff]   ;;  %v38_v38 = vunpack.c.0.s8 %v37_v35 }
   0x4   :  { %1464 = vmatprep.subr.bf16.mxu1 %v1599_v2  ;;  %1506 = vmatprep.subr.bf16.mxu0 %v1600_v3  ;;  %v1602_v5 = vld [vmem:[%s2175_s3 + $0x138] sm:$0xff]   ;;  %v1606_v9 = vld [vmem:[%s2175_s3 + $0x130] sm:$0xff]   ;;  %v1608_v11 = vld [vmem:[%s2175_s3 + $0x168] sm:$0xff]  }
   0x5   :  { %1507 = vmatpush3.bf16.msra.mxu0 %v1602_v5  ;;  %v1609_v12 = vld [vmem:[%s2175_s3 + $0x20] sm:$0xff]   ;;  %v1610_v13 = vld [vmem:[%s2175_s3 + $0x128] sm:$0xff]   ;;  %v1611_v14 = vld [vmem:[%s2175_s3 + $0x58] sm:$0xff]   ;;  %v1879_v41 = vsub.s32 %v38_v38, %v1864_v31 }
   0x6   :  { %1508 = vmatprep.subr.bf16.mxu0 %v1604_v7  ;;  %v1612_v15 = vld [vmem:[%s2175_s3 + $0x160] sm:$0xff]   ;;  %v1613_v16 = vld [vmem:[%s2175_s3 + $0x18] sm:$0xff]   ;;  %v1615_v18 = vld [vmem:[%s2175_s3 + $0x50] sm:$0xff]  }
   0x7   :  { %1465 = vmatpush3.bf16.msra.mxu1 %v1601_v4  ;;  %v1614_v17 = vld [vmem:[%s2175_s3 + $0x120] sm:$0xff]   ;;  %v1616_v19 = vld [vmem:[%s2175_s3 + $0x158] sm:$0xff]   ;;  %v1617_v20 = vld [vmem:[%s2175_s3 + $0x10] sm:$0xff]  }
   0x8   :  { %1466 = vmatprep.subr.bf16.mxu1 %v1603_v6  ;;  %v1618_v21 = vld [vmem:[%s2175_s3 + $0x118] sm:$0xff]   ;;  %v1619_v22 = vld [vmem:[%s2175_s3 + $0x48] sm:$0xff]   ;;  %v1620_v23 = vld [vmem:[%s2175_s3 + $0x150] sm:$0xff]  }
   0x9   :  { %1509 = vmatpush3.bf16.msra.mxu0 %v1606_v9  ;;  %v1621_v24 = vld [vmem:[%s2175_s3 + $0x8] sm:$0xff]   ;;  %v1622_v25 = vld [vmem:[%s2175_s3 + $0x110] sm:$0xff]   ;;  %v1623_v27 = vld [vmem:[%s2175_s3 + $0x40] sm:$0xff]  }
   0xa   :  { %1510 = vmatprep.subr.bf16.mxu0 %v1608_v11  ;;  %v1624_v28 = vld [vmem:[%s2175_s3 + $0x148] sm:$0xff]   ;;  %v1625_v29 = vld [vmem:[%s2175_s3] sm:$0xff]   ;;  %v1627_v33 = vld [vmem:[%s2175_s3 + $0xf8] sm:$0xff]  }
   0xb   :  { %1467 = vmatpush3.bf16.msra.mxu1 %v1605_v8  ;;  %v1626_v30 = vld [vmem:[%s2175_s3 + $0x108] sm:$0xff]   ;;  %v85_v32 = vld [vmem:[%s2173_s1] sm:$0xff]  ;;  %v1632_v44 = vld [vmem:[%s2174_s2 + $0xf8] sm:$0xff]  }
   0xc   :  { %1468 = vmatprep.subr.bf16.mxu1 %v1607_v10  ;;  %v87_v36 = vmax.f32 %v85_v32, 0.0  ;;  %v1628_v37 = vld [vmem:[%s2175_s3 + $0x140] sm:$0xff]   ;;  %v86_v42 = vld [vmem:[%s2173_s1 + $0x8] sm:$0xf]  ;;  %v1629_v51 = vld [vmem:[%s2175_s3 + $0xb8] sm:$0xff]  }
   0xd   :  { %1511 = vmatpush3.bf16.msra.mxu0 %v1610_v13  ;;  %v1630_v40 = vld [vmem:[%s2175_s3 + $0x100] sm:$0xff]   ;;  %v88_v43 = vmax.f32 %v86_v42, 0.0  ;;  %v1631_v54 = vld [vmem:[%s2175_s3 + $0xf0] sm:$0xff]   ;;  %v1634_v57 = vld [vmem:[%s2174_s2 + $0xb8] sm:$0xff]  }
   0xe   :  { %1512 = vmatprep.subr.bf16.mxu0 %v1612_v15  ;;  %v91_v39 = vcombine.high %v87_v36, %v87_v36  ;;  %v98_v45 = vrot.slane %v87_v36, %v1879_v41  ;;  %v1636_v58 = vld [vmem:[%s2174_s2 + $0xf0] sm:$0xff]   ;;  %v1635_v61 = vld [vmem:[%s2175_s3 + $0xe8] sm:$0xff]   ;;  %v1639_v1 = vld [vmem:[%s2175_s3 + $0xe0] sm:$0xff]   ;;  %v1731_v36 = vmov 0  }
   0xf   :  { %1469 = vmatpush3.bf16.msra.mxu1 %v1609_v12  ;;  %v114_v47 = vrot.slane %v88_v43, %v1879_v41  ;;  %v1633_v60 = vld [vmem:[%s2175_s3 + $0xb0] sm:$0xff]   ;;  %v1640_v63 = vld [vmem:[%s2174_s2 + $0xe8] sm:$0xff]   ;;  %v1644_v3 = vld [vmem:[%s2174_s2 + $0xe0] sm:$0xff]  }
  0x10   :  { %1470 = vmatprep.subr.bf16.mxu1 %v1611_v14  ;;  %v1889_v46 = vrot.slane %v91_v39, %v1879_v41  ;;  %v106_v48 = vcombine.high %v98_v45, %v98_v45  ;;  %v122_v50 = vpack.c.bf16 %v98_v45, %v98_v45  ;;  %v1638_v62 = vld [vmem:[%s2174_s2 + $0xb0] sm:$0xff]   ;;  %v1637_v0 = vld [vmem:[%s2175_s3 + $0xa8] sm:$0xff]   ;;  %v1641_v4 = vld [vmem:[%s2175_s3 + $0xa0] sm:$0xff]  }
  0x11   :  { %1513 = vmatpush3.bf16.msra.mxu0 %v1614_v17  ;;  %v115_v52 = vcombine.high %v114_v47, %v114_v47  ;;  %v126_v55 = vpack.c.bf16 %v114_v47, %v114_v47  ;;  %v1642_v2 = vld [vmem:[%s2174_s2 + $0xa8] sm:$0xff]   ;;  %v1643_v5 = vld [vmem:[%s2175_s3 + $0xd8] sm:$0xff]   ;;  %v1646_v6 = vld [vmem:[%s2174_s2 + $0xa0] sm:$0xff]  }
  0x12   :  { %1514 = vmatprep.subr.bf16.mxu0 %v1616_v19  ;;  %v107_v49 = vcombine.high %v1889_v46, %v1889_v46  ;;  %v123_v53 = vpack.c.bf16 %v106_v48, %v106_v48  ;;  %v1648_v7 = vld [vmem:[%s2174_s2 + $0xd8] sm:$0xff]   ;;  %v1647_v9 = vld [vmem:[%s2175_s3 + $0xd0] sm:$0xff]   ;;  %v1651_v13 = vld [vmem:[%s2175_s3 + $0xc8] sm:$0xff]  }
  0x13   :  { %1471 = vmatpush3.bf16.msra.mxu1 %v1613_v16  ;;  %v127_v56 = vpack.c.bf16 %v115_v52, %v115_v52  ;;  %v1645_v8 = vld [vmem:[%s2175_s3 + $0x98] sm:$0xff]   ;;  %v1652_v11 = vld [vmem:[%s2174_s2 + $0xd0] sm:$0xff]   ;;  %v1656_v15 = vld [vmem:[%s2174_s2 + $0xc8] sm:$0xff]  }
  0x14   :  { %1472 = vmatprep.subr.bf16.mxu1 %v1615_v18  ;;  %669 = vmatprep.mubr.bf16.mxu1 %v123_v53  ;;  %v125_v59 = vpack.c.bf16 %v107_v49, %v107_v49  ;;  %v1650_v10 = vld [vmem:[%s2174_s2 + $0x98] sm:$0xff]   ;;  %v1649_v12 = vld [vmem:[%s2175_s3 + $0x90] sm:$0xff]   ;;  %v1653_v16 = vld [vmem:[%s2175_s3 + $0x88] sm:$0xff]  }
  0x15   :  { %1515 = vmatpush3.bf16.msra.mxu0 %v1618_v21  ;;  %749 = vmatprep.mubr.bf16.mxu0 %v127_v56  ;;  %v1654_v14 = vld [vmem:[%s2174_s2 + $0x90] sm:$0xff]   ;;  %v1655_v17 = vld [vmem:[%s2175_s3 + $0xc0] sm:$0xff]   ;;  %v1658_v18 = vld [vmem:[%s2174_s2 + $0x88] sm:$0xff]  }
  0x16   :  { %1516 = vmatprep.subr.bf16.mxu0 %v1620_v23  ;;  %v1660_v19 = vld [vmem:[%s2174_s2 + $0xc0] sm:$0xff]   ;;  %v1659_v23 = vld [vmem:[%s2174_s2 + $0x78] sm:$0xff]   ;;  %v1666_v42 = vld [vmem:[%s2174_s2 + $0x68] sm:$0xff]  }
  0x17   :  { %1473 = vmatpush3.bf16.msra.mxu1 %v1617_v20  ;;  %v29_v20 = vld [vmem:[%s2172_s0] sm:$0xff]  ;;  %v1661_v32 = vld [vmem:[%s2174_s2 + $0x38] sm:$0xff]   ;;  %v1668_v43 = vld [vmem:[%s2174_s2 + $0x1b0] sm:$0xff]  }
  0x18   :  { %1474 = vmatprep.subr.bf16.mxu1 %v1619_v22  ;;  %v1657_v21 = vld [vmem:[%s2175_s3 + $0x80] sm:$0xff]   ;;  %v31_v22 = vmax.f32 %v29_v20, 0.0  ;;  %v1665_v39 = vld [vmem:[%s2174_s2 + $0x1b8] sm:$0xff]   ;;  %v1676_v53 = vld [vmem:[%s2174_s2 + $0x10] sm:$0xff]  }
  0x19   :  { %1517 = vmatpush3.bf16.msra.mxu0 %v1622_v25  ;;  %v1669_v45 = vld [vmem:[%s2174_s2 + $0x60] sm:$0xff]   ;;  %v1672_v48 = vld [vmem:[%s2174_s2 + $0x58] sm:$0xff]   ;;  %v1679_v56 = vld [vmem:[%s2174_s2 + $0x8] sm:$0xff]  }
  0x1a   :  { %1518 = vmatprep.subr.bf16.mxu0 %v1624_v28  ;;  %v35_v25 = vcombine.high %v31_v22, %v31_v22  ;;  %v124_v28 = vpack.c.bf16 %v1889_v46, %v1889_v46  ;;  %v1671_v46 = vld [vmem:[%s2174_s2 + $0x1a8] sm:$0xff]   ;;  %v1670_v47 = vld [vmem:[%s2174_s2 + $0x20] sm:$0xff]   ;;  %v1677_v52 = vld [vmem:[%s2174_s2 + $0x198] sm:$0xff]  }
  0x1b   :  { %1475 = vmatpush3.bf16.msra.mxu1 %v1621_v24  ;;  %v1662_v24 = vld [vmem:[%s2174_s2 + $0x80] sm:$0xff]  }
  0x1c   :  { %1476 = vmatprep.subr.bf16.mxu1 %v1623_v27  ;;  %v1991_v27 = vrot.slane %v31_v22, %v1879_v41  ;;  %v1674_v49 = vld [vmem:[%s2174_s2 + $0x1a0] sm:$0xff]  }
  0x1d   :  { %1519 = vmatpush3.bf16.msra.mxu0 %v1626_v30 }
  0x1e   :  { %1520 = vmatprep.subr.bf16.mxu0 %v1628_v37  ;;  %v50_v30 = vcombine.high %v1991_v27, %v1991_v27 }
  0x1f   :  { %1477 = vmatpush3.bf16.msra.mxu1 %v1625_v29  ;;  %v49_v29 = vrot.slane %v35_v25, %v1879_v41 }
  0x20   :  { %1484 = vmatprep.subr.bf16.mxu1 %v1627_v33  ;;  %v1663_v33 = vld [vmem:[%s2174_s2 + $0x70] sm:$0xff]   ;;  %v78_v35 = vpack.c.bf16 %v50_v30, %v50_v30 }
  0x21   :  { %1521 = vmatpush3.bf16.msra.mxu0 %v1630_v40  ;;  %v51_v34 = vcombine.high %v49_v29, %v49_v29  ;;  %v79_v37 = vpack.c.bf16 %v49_v29, %v49_v29  ;;  %v1664_v40 = vld [vmem:[%s2174_s2 + $0x30] sm:$0xff]  }
  0x22   :  { %1550 = vmatprep.subr.bf16.mxu0 %v1632_v44  ;;  %670 = vmatmul.mubr.bf16.vlgmr.msra.gmra.mxu1 %v122_v50  ;;  %v1667_v44 = vld [vmem:[%s2174_s2 + $0x28] sm:$0xff]   ;;  %v1673_v50 = vld [vmem:[%s2174_s2 + $0x18] sm:$0xff]  }
  0x23   :  { %1485 = vmatpush3.bf16.msra.mxu1 %v1629_v51  ;;  %709 = vmatprep.mubr.bf16.mxu1 %v125_v59  ;;  %v80_v38 = vpack.c.bf16 %v51_v34, %v51_v34  ;;  %v1675_v51 = vld [vmem:[%s2174_s2 + $0x50] sm:$0xff]   ;;  %v1682_v59 = vld [vmem:[%s2174_s2] sm:$0xff]  }
  0x24   :  { %750 = vmatmul.mubr.bf16.vlgmr.msra.gmra.mxu0 %v126_v55  ;;  %1486 = vmatprep.subr.bf16.mxu1 %v1631_v54  ;;  %v1678_v54 = vld [vmem:[%s2174_s2 + $0x48] sm:$0xff]   ;;  %v1680_v55 = vld [vmem:[%s2174_s2 + $0x190] sm:$0xff]  }
  0x25   :  { %1551 = vmatpush3.bf16.msra.mxu0 %v1634_v57  ;;  %1212 = vmatprep.mubr.bf16.mxu0 %v80_v38  ;;  %v1681_v57 = vld [vmem:[%s2174_s2 + $0x40] sm:$0xff]  }
  0x26   :  { %1552 = vmatprep.subr.bf16.mxu0 %v1636_v58  ;;  %v1683_v58 = vld [vmem:[%s2174_s2 + $0x188] sm:$0xff]  }
  0x27   :  { %1487 = vmatpush3.bf16.msra.mxu1 %v1633_v60  ;;  %v1684_v60 = vld [vmem:[%s2174_s2 + $0x178] sm:$0xff]  }
  0x28   :  { %1488 = vmatprep.subr.bf16.mxu1 %v1635_v61  ;;  %v1685_v61 = vld [vmem:[%s2174_s2 + $0x138] sm:$0xff]  }
  0x29   :  { %1553 = vmatpush3.bf16.msra.mxu0 %v1638_v62  ;;  %v77_v62 = vpack.c.bf16 %v1991_v27, %v1991_v27 }
  0x2a   :  { %1554 = vmatprep.subr.bf16.mxu0 %v1640_v63  ;;  %v1686_v63 = vld [vmem:[%s2174_s2 + $0x180] sm:$0xff]  }
  0x2b   :  { %1489 = vmatpush3.bf16.msra.mxu1 %v1637_v0  ;;  %v1689_v0 = vld [vmem:[%s2174_s2 + $0x1f0] ss:$0 sps:$4 sm:$0xff]  }
  0x2c   :  { %1490 = vmatprep.subr.bf16.mxu1 %v1639_v1  ;;  %v1687_v1 = vld [vmem:[%s2174_s2 + $0x170] sm:$0xff]  }
  0x2d   :  { %1555 = vmatpush3.bf16.msra.mxu0 %v1642_v2  ;;  %v1688_v2 = vld [vmem:[%s2174_s2 + $0x130] sm:$0xff]  }
  0x2e   :  { %1556 = vmatprep.subr.bf16.mxu0 %v1644_v3  ;;  %v1138_v3 = vsel %vm1136_vm0, %v1689_v0, 0 }
  0x2f   :  { %1491 = vmatpush3.bf16.msra.mxu1 %v1641_v4  ;;  %v1690_v4 = vld [vmem:[%s2174_s2 + $0x168] sm:$0xff]  }
  0x30   :  { %1492 = vmatprep.subr.bf16.mxu1 %v1643_v5  ;;  %v30_v5 = vld [vmem:[%s2172_s0 + $0x8] sm:$0xff] }
  0x31   :  { %1557 = vmatpush3.bf16.msra.mxu0 %v1646_v6  ;;  %v1692_v6 = vld [vmem:[%s2174_s2 + $0x1e8] sm:$0xff]  }
  0x32   :  { %1558 = vmatprep.subr.bf16.mxu0 %v1648_v7  ;;  %v32_v7 = vmax.f32 %v30_v5, 0.0 }
  0x33   :  { %1493 = vmatpush3.bf16.msra.mxu1 %v1645_v8 }
  0x34   :  { %1494 = vmatprep.subr.bf16.mxu1 %v1647_v9 }
  0x35   :  { %1559 = vmatpush3.bf16.msra.mxu0 %v1650_v10 }
  0x36   :  { %1560 = vmatprep.subr.bf16.mxu0 %v1652_v11 }
  0x37   :  { %1495 = vmatpush3.bf16.msra.mxu1 %v1649_v12 }
  0x38   :  { %1496 = vmatprep.subr.bf16.mxu1 %v1651_v13 }
  0x39   :  { %1561 = vmatpush3.bf16.msra.mxu0 %v1654_v14 }
  0x3a   :  { %1562 = vmatprep.subr.bf16.mxu0 %v1656_v15 }
  0x3b   :  { %1497 = vmatpush3.bf16.msra.mxu1 %v1653_v16 }
  0x3c   :  { %1498 = vmatprep.subr.bf16.mxu1 %v1655_v17 }
  0x3d   :  { %1563 = vmatpush3.bf16.msra.mxu0 %v1658_v18 }
  0x3e   :  { %1564 = vmatprep.subr.bf16.mxu0 %v1660_v19 }
  0x3f   :  { %1499 = vmatpush3.bf16.msra.mxu1 %v1657_v21 }
  0x40   :  { %1528 = vmatprep.subr.bf16.mxu1 %v1659_v23 }
  0x41   :  { %1565 = vmatpush3.bf16.msra.mxu0 %v1662_v24 }
  0x42   :  { %1260 = vmatprep.subr.bf16.mxu0 %v1731_v36  ;;  %710 = vmatmul.mubr.bf16.vlgmr.msra.gmra.mxu1 %v124_v28 }
  0x43   :  { %1529 = vmatpush3.bf16.msra.mxu1 %v1661_v32  ;;  %1172 = vmatprep.mubr.bf16.mxu1 %v78_v35 }
  0x44   :  { %1530 = vmatprep.subr.bf16.mxu1 %v1663_v33  ;;  %1213 = vmatmul.mubr.bf16.vlgmr.msra.gmra.mxu0 %v79_v37 }
  0x45   :  { %1261 = vmatpush1.bf16.msra.mxu0 %v1665_v39 }
  0x46   :  { %1262 = vmatprep.subr.bf16.mxu0 %v1731_v36 }
  0x47   :  { %1531 = vmatpush3.bf16.msra.mxu1 %v1664_v40 }
  0x48   :  { %1532 = vmatprep.subr.bf16.mxu1 %v1666_v42 }
  0x49   :  { %1263 = vmatpush1.bf16.msra.mxu0 %v1668_v43 }
  0x4a   :  { %1264 = vmatprep.subr.bf16.mxu0 %v1731_v36 }
  0x4b   :  { %1533 = vmatpush3.bf16.msra.mxu1 %v1667_v44 }
  0x4c   :  { %1534 = vmatprep.subr.bf16.mxu1 %v1669_v45 }
  0x4d   :  { %1265 = vmatpush1.bf16.msra.mxu0 %v1671_v46 }
  0x4e   :  { %1266 = vmatprep.subr.bf16.mxu0 %v1731_v36 }
  0x4f   :  { %1535 = vmatpush3.bf16.msra.mxu1 %v1670_v47 }
  0x50   :  { %1536 = vmatprep.subr.bf16.mxu1 %v1672_v48 }
  0x51   :  { %1267 = vmatpush1.bf16.msra.mxu0 %v1674_v49 }
  0x52   :  { %1268 = vmatprep.subr.bf16.mxu0 %v1731_v36 }
  0x53   :  { %1537 = vmatpush3.bf16.msra.mxu1 %v1673_v50 }
  0x54   :  { %1538 = vmatprep.subr.bf16.mxu1 %v1675_v51 }
  0x55   :  { %1269 = vmatpush1.bf16.msra.mxu0 %v1677_v52 }
  0x56   :  { %1270 = vmatprep.subr.bf16.mxu0 %v1731_v36 }
  0x57   :  { %1539 = vmatpush3.bf16.msra.mxu1 %v1676_v53 }
  0x58   :  { %1540 = vmatprep.subr.bf16.mxu1 %v1678_v54 }
  0x59   :  { %1271 = vmatpush1.bf16.msra.mxu0 %v1680_v55 }
  0x5a   :  { %1272 = vmatprep.subr.bf16.mxu0 %v1731_v36 }
  0x5b   :  { %1541 = vmatpush3.bf16.msra.mxu1 %v1679_v56 }
  0x5c   :  { %1542 = vmatprep.subr.bf16.mxu1 %v1681_v57 }
  0x5d   :  { %1273 = vmatpush1.bf16.msra.mxu0 %v1683_v58 }
  0x5e   :  { %1274 = vmatprep.subr.bf16.mxu0 %v1731_v36 }
  0x5f   :  { %1543 = vmatpush3.bf16.msra.mxu1 %v1682_v59 }
  0x60   :  { %1572 = vmatprep.subr.bf16.mxu1 %v1684_v60 }
  0x61   :  { %1275 = vmatpush1.bf16.msra.mxu0 %v1686_v63 }
  0x62   :  { %1173 = vmatmul.mubr.bf16.vlgmr.msra.gmra.mxu1 %v77_v62  ;;  %1278 = vmatprep.subr.bf16.mxu0 %v1731_v36 }
  0x63   :  { %1573 = vmatpush3.bf16.msra.mxu1 %v1685_v61 }
  0x64   :  { %1574 = vmatprep.subr.bf16.mxu1 %v1687_v1 }
  0x65   :  { %1279 = vmatpush2.bf16.msra.mxu0 %v1138_v3 }
  0x66   :  { %13 = vsyncpa [#allocation4], 0  ;;  %1280 = vmatprep.subr.bf16.mxu0 %v1731_v36  ;;  %v1691_v8 = vld [vmem:[%s2174_s2 + $0x128] sm:$0xff]   ;;  %v1693_v9 = vld [vmem:[%s2174_s2 + $0x160] sm:$0xff]   ;;  %v52_v10 = vcombine.high %v32_v7, %v32_v7  ;;  %v59_v11 = vrot.slane %v32_v7, %v1879_v41  ;;  %vm1132_vm1 = vcmask 850944   ;;  %vm1317_vm2 = vcmask 254976  }
  0x67   :  { %1575 = vmatpush3.bf16.msra.mxu1 %v1688_v2  ;;  %v1695_v12 = vld [vmem:[%s2174_s2 + $0x1e0] sm:$0xff]   ;;  %v1696_v16 = vld [vmem:[%s2174_s2 + $0x158] sm:$0xff]   ;;  %v1699_v21 = vld [vmem:[%s2174_s2 + $0x150] sm:$0xff]   ;;  %vm1332_vm3 = vcmask 8192  }
  0x68   :  { %1576 = vmatprep.subr.bf16.mxu1 %v1690_v4  ;;  %v67_v13 = vcombine.high %v59_v11, %v59_v11  ;;  %v66_v14 = vrot.slane %v52_v10, %v1879_v41  ;;  %v1694_v15 = vld [vmem:[%s2174_s2 + $0x120] sm:$0xff]   ;;  %v1698_v41 = vld [vmem:[%s2174_s2 + $0x1d8] sm:$0xff]   ;;  %v1701_v22 = vld [vmem:[%s2174_s2 + $0x1d0] sm:$0xff]   ;;  %v81_v33 = vpack.c.bf16 %v59_v11, %v59_v11 }
  0x69   :  { %1281 = vmatpush2.bf16.msra.mxu0 %v1692_v6  ;;  %v1697_v20 = vld [vmem:[%s2174_s2 + $0x118] sm:$0xff]   ;;  %v1700_v23 = vld [vmem:[%s2174_s2 + $0x110] sm:$0xff]   ;;  %v1702_v24 = vld [vmem:[%s2174_s2 + $0x148] sm:$0xff]  }
  0x6a   :  { %1282 = vmatprep.subr.bf16.mxu0 %v1731_v36  ;;  %v82_v17 = vpack.c.bf16 %v67_v13, %v67_v13  ;;  %v68_v18 = vcombine.high %v66_v14, %v66_v14  ;;  %v1704_v25 = vld [vmem:[%s2174_s2 + $0x1c8] sm:$0xff]   ;;  %v1705_v28 = vld [vmem:[%s2174_s2 + $0x140] sm:$0xff]   ;;  %v83_v32 = vpack.c.bf16 %v66_v14, %v66_v14 }
  0x6b   :  { %1577 = vmatpush3.bf16.msra.mxu1 %v1691_v8  ;;  %v1703_v27 = vld [vmem:[%s2174_s2 + $0x108] sm:$0xff]   ;;  %v1707_v29 = vld [vmem:[%s2174_s2 + $0x1c0] sm:$0xff]  }
  0x6c   :  { %1578 = vmatprep.subr.bf16.mxu1 %v1693_v9  ;;  %1252 = vmatprep.mubr.bf16.mxu1 %v82_v17  ;;  %v84_v19 = vpack.c.bf16 %v68_v18, %v68_v18  ;;  %v1706_v30 = vld [vmem:[%s2174_s2 + $0x100] sm:$0xff]   ;;  %v1326_v17 = vand.u32 127, %v39_v26  ;;  %v1322_v18 = vstv %s2178_s6 }
  0x6d   :  { %1283 = vmatpush2.bf16.msra.mxu0 %v1695_v12  ;;  %v1460_v10 = vld [vmem:[%s2176_s4] ss:$0 sm:$0xff]  ;;  %s1732_s4 = smov [#allocation3]  }
  0x6e   :  { %1284 = vmatprep.subr.bf16.mxu0 %v1731_v36  ;;  %1459 = vmatprep.mubr.msk.bf16.mxu0 %vm1132_vm1, %v84_v19  ;;  %v1461_v13 = vld [vmem:[%s2177_s5] ss:$0 sm:$0xff]  ;;  %s1340_s16 = sshll.u32 %s1732_s4, 4  ;;  %s1341_s16 = int_to_ptr.vmem [resolvable:$true] %s1340_s16 }
  0x6f   :  { %1579 = vmatpush3.bf16.msra.mxu1 %v1694_v15  ;;  %s1708_s5 = scalar_lea.vmem %s1341_s16, 16  ;;  %s1712_s17 = scalar_lea.vmem %s1341_s16, 32 }
  0x70   :  { %1580 = vmatprep.subr.bf16.mxu1 %v1696_v16  ;;  %p1709_p0 = scmp.ne.s32.totalorder %s1341_s16, %s1708_s5  ;;  %p1713_p1 = scmp.lt.s32.totalorder %s1341_s16, %s1341_s16 }
  0x71   :  { %1285 = vmatpush2.bf16.msra.mxu0 %v1698_v41  ;;  %v1329_v41 = vsub.s32 %v1326_v17, %v1864_v31  ;;  %p1714_p2 = scmp.lt.s32.totalorder %s1712_s17, %s1708_s5 }
  0x72   :  { %1286 = vmatprep.subr.bf16.mxu0 %v1731_v36 }
  0x73   :  { %1581 = vmatpush3.bf16.msra.mxu1 %v1697_v20  ;;  %p1715_p3 = por %p1714_p2, %p1713_p1 }
  0x74   :  { %1582 = vmatprep.subr.bf16.mxu1 %v1699_v21 }
  0x75   :  { %1287 = vmatpush2.bf16.msra.mxu0 %v1701_v22  ;;  %p1716_p4 = pnand %p1715_p3, %p1709_p0 }
  0x76   :  { %1288 = vmatprep.subr.bf16.mxu0 %v1731_v36 }
  0x77   :  { %1583 = vmatpush3.bf16.msra.mxu1 %v1700_v23 }
  0x78   :  { %1584 = vmatprep.subr.bf16.mxu1 %v1702_v24 }
  0x79   :  { %1289 = vmatpush2.bf16.msra.mxu0 %v1704_v25 }
  0x7a   :  { %1290 = vmatprep.subr.bf16.mxu0 %v1731_v36 }
  0x7b   :  { %1585 = vmatpush3.bf16.msra.mxu1 %v1703_v27 }
  0x7c   :  { %1586 = vmatprep.subr.bf16.mxu1 %v1705_v28 }
  0x7d   :  { %1291 = vmatpush2.bf16.msra.mxu0 %v1707_v29 }
  0x7f   :  { %1587 = vmatpush3.bf16.msra.mxu1 %v1706_v30 }
  0x80   :  { %1293 = vmatmul.mubr.bf16.vlgmr.msra.gmra.mxu0 %v83_v32 }
  0x82   :  { %1253 = vmatmul.mubr.bf16.vlgmr.msra.gmra.mxu1 %v81_v33 }
  0xe2   :  { %v1478_v34 = vpop.f32.mrf.mxu1 }
  0xe4   :  { %v1522_v35 = vpop.f32.mrf.mxu0  ;;  %v1479_v37 = vpop.f32.mrf.mxu1 }
  0xe5   :  { %v1480_v38 = vadd.f32 %v1479_v37, %v1478_v34 }
  0xe6   :  { %v1523_v39 = vpop.f32.mrf.mxu0  ;;  %v1481_v40 = vpop.f32.mrf.mxu1 }
  0xe7   :  { %v1524_v42 = vadd.f32 %v1523_v39, %v1522_v35 }
  0xe8   :  { %v1525_v43 = vpop.f32.mrf.mxu0  ;;  %v1482_v36 = vpop.f32.mrf.mxu1 }
  0xea   :  { %v1526_v44 = vpop.f32.mrf.mxu0 }
 0x102   :  { %v1500_v45 = vpop.f32.mrf.mxu1 }
 0x104   :  { %v1501_v46 = vpop.f32.mrf.mxu1  ;;  %v1566_v48 = vpop.f32.mrf.mxu0 }
 0x105   :  { %v1502_v47 = vadd.f32 %v1501_v46, %v1500_v45 }
 0x106   :  { %v1503_v49 = vpop.f32.mrf.mxu1  ;;  %v1567_v51 = vpop.f32.mrf.mxu0 }
 0x107   :  { %v712_v50 = vadd.f32 %v1502_v47, %v1480_v38  ;;  %v1568_v0 = vadd.f32 %v1567_v51, %v1566_v48 }
 0x108   :  { %v1504_v52 = vpop.f32.mrf.mxu1  ;;  %v1569_v53 = vpop.f32.mrf.mxu0 }
 0x109   :  { %v752_v54 = vadd.f32 %v1524_v42, %v712_v50 }
 0x10a   :  { %v1570_v55 = vpop.f32.mrf.mxu0 }
 0x122   :  { %v1544_v56 = vpop.f32.mrf.mxu1 }
 0x124   :  { %v1545_v57 = vpop.f32.mrf.mxu1 }
 0x125   :  { %v1546_v60 = vadd.f32 %v1545_v57, %v1544_v56 }
 0x126   :  { %v1547_v58 = vpop.f32.mrf.mxu1 }
 0x127   :  { %v1175_v61 = vadd.f32 %v1546_v60, %v752_v54 }
 0x128   :  { %v1548_v59 = vpop.f32.mrf.mxu1 }
 0x129   :  { %v1215_v3 = vadd.f32 %v1568_v0, %v1175_v61 }
 0x140   :  { %v1294_v62 = vpop.f32.mrf.mxu0 }
 0x142   :  { %v1588_v63 = vpop.f32.mrf.mxu1  ;;  %v1296_v1 = vpop.f32.mrf.mxu0 }
 0x144   :  { %v1589_v2 = vpop.f32.mrf.mxu1  ;;  %v1297_v5 = vpop.f32.mrf.mxu0 }
 0x145   :  { %v1590_v4 = vadd.f32 %v1589_v2, %v1588_v63 }
 0x146   :  { %v1591_v6 = vpop.f32.mrf.mxu1  ;;  %v1298_v8 = vpop.f32.mrf.mxu0 }
 0x147   :  { %v1255_v7 = vadd.f32 %v1590_v4, %v1215_v3 }
 0x148   :  { %v1592_v9 = vpop.f32.mrf.mxu1 }
 0x149   :  { %v1295_v11 = vadd.f32 %v1294_v62, %v1255_v7 }
 0x14b   :  { %v1307_v12 = vadd.f32 %v1460_v10, %v1295_v11 }
 0x14d   :  { %v1308_v14 = vmax.f32 %v1307_v12, 0.0 }
 0x14f   :  { %v1316_v15 = vmul.f32 %v1461_v13, %v1308_v14 }
 0x151   :  { %v1318_v16 = vsel %vm1317_vm2, %v1316_v15, 0.0 }
 0x152   :  { %1319 = vadd.xlane.f32.xlu0 %v1318_v16 }
 0x1db   :  { %v1320_v19 = vpop.xlane.xlu0 %1319 }
 0x1dc   :  { %v1323_v20 = vadd.f32 %v1322_v18, %v1320_v19 }
 0x1de   :  { %v1330_v21 = vrot.slane %v1323_v20, %v1329_v41 }
 0x1e0   :  { %1333 = vst.msk [vmem:[#allocation3] sm:$0x1] %vm1332_vm3, %v1330_v21 }
 0x1e1   :  { %1719 = shalt.err (!%p1716_p4)
}
 0x1e2   :  { %1343 = dma.vmem_to_hbm [thread:$0]  %s1341_s16, 16, %s2179_s7, [#allocation4]  }
 0x1e3   :  { %1728 = dma.done.wait [#allocation4], 16  }
 0x1e4   :  { %1729 = vsyncadd [#allocation4], 4294967280 }
 0x1e5   :  { %1347 = vsyncpa [#allocation4], 1 }

</bundles_post_ra>
